<compile_context>
chip_gen: v6e
topology: v6e:2x2x1
jax: 0.10.0
libtpu: 0.0.40
codegen_flags: <defaults>
</compile_context>

<pallas_src>
import functools

import jax
import jax.numpy as jnp
import numpy as np
from jax.experimental import pallas as pl
from jax.experimental.pallas import tpu as pltpu


# ----------------------------------------------------------------------------
# helpers
# ----------------------------------------------------------------------------
def _round_up(n, m):
    return ((n + m - 1) // m) * m


def _ceil_div(a, b):
    return -(-a // b)


def _pick_tiling(n_rows, k, cout, itemsize, *, tb_max=2048, min_steps=2,
                 vmem_budget=10 * 1024 * 1024):
    """Pick the row-slab size TB, grid length and padded row count.

    * TB is capped so double-buffered (input slab + output slab) stays within
      a conservative VMEM budget (works under the v5e 16 MiB default).
    * The grid gets >= `min_steps` steps whenever there are enough sublane
      groups of rows (v7x megacore), and TB is chosen so padding is at most
      one sublane group (avoids wasted tail DMA/MXU work).
    """
    mult = 16 if itemsize < 4 else 8        # bf16 packs 16 rows per sublane tile
    per_row = 2 * (k + cout) * itemsize     # double-buffered in + out bytes/row
    tb_cap = max(mult, (vmem_budget // max(per_row, 1)) // mult * mult)
    tb_max = max(mult, min(tb_max, tb_cap))

    n_al = _round_up(max(n_rows, 1), mult)
    steps_max = n_al // mult
    steps = min(steps_max, max(min_steps, _ceil_div(n_al, tb_max)))
    steps = max(steps, 1)
    tb = _round_up(_ceil_div(n_al, steps), mult)
    grid = _ceil_div(n_al, tb)
    n_pad = grid * tb
    return tb, grid, n_pad


# ----------------------------------------------------------------------------
# fused GEMM + bias + activation Pallas kernel (the workhorse for every conv)
# ----------------------------------------------------------------------------
def _gemm_bias_act_kernel(x_ref, w_ref, b_ref, o_ref, *, act):
    # x_ref: (TB, K) row slab; w_ref: (K, Cout) VMEM-resident; b_ref: (1, Cout)
    acc = jnp.dot(x_ref[...], w_ref[...], preferred_element_type=jnp.float32)
    acc = acc + b_ref[...]
    if act == "selu":
        alpha = 1.6732632423543772
        scale = 1.0507009873554805
        neg = alpha * (jnp.exp(jnp.minimum(acc, 0.0)) - 1.0)
        acc = scale * jnp.where(acc > 0.0, acc, neg)
    o_ref[...] = acc.astype(o_ref.dtype)


def matmul_bias_act(x, w, b, *, act="none", compute_dtype=None):
    """out = act(x @ w + b); x:(N,K), w:(K,Cout), b:(Cout,). Output keeps x.dtype."""
    n, k = x.shape
    k2, cout = w.shape
    assert k2 == k
    out_dtype = x.dtype
    cdt = jnp.dtype(compute_dtype) if compute_dtype is not None else jnp.dtype(x.dtype)

    tb, grid, n_pad = _pick_tiling(n, k, cout, cdt.itemsize)

    xc = x.astype(cdt)
    wc = w.astype(cdt)
    bc = jnp.asarray(b, jnp.float32).reshape(1, cout)
    if n_pad != n:
        # Adaptive TB keeps this to at most one sublane group of extra rows.
        xc = jnp.pad(xc, ((0, n_pad - n), (0, 0)))

    out = pl.pallas_call(
        functools.partial(_gemm_bias_act_kernel, act=act),
        out_shape=jax.ShapeDtypeStruct((n_pad, cout), out_dtype),
        grid_spec=pltpu.PrefetchScalarGridSpec(
            num_scalar_prefetch=0,
            grid=(grid,),
            in_specs=[
                pl.BlockSpec((tb, k), lambda i: (i, 0)),      # row slab
                pl.BlockSpec((k, cout), lambda i: (0, 0)),    # weights, resident
                pl.BlockSpec((1, cout), lambda i: (0, 0)),    # bias, resident
            ],
            out_specs=pl.BlockSpec((tb, cout), lambda i: (i, 0)),
        ),
        compiler_params=pltpu.CompilerParams(
            dimension_semantics=("parallel",)),
    )(xc, wc, bc)

    return out[:n]


# ----------------------------------------------------------------------------
# convolution = im2col (JAX data movement) + fused Pallas GEMM
# ----------------------------------------------------------------------------
def pallas_conv2d(x_nhwc, w_hwio, b, padding, act, *, compute_dtype=None):
    B, H, W, Cin = x_nhwc.shape
    kh, kw, _, Cout = w_hwio.shape
    if padding > 0:
        xp = jnp.pad(x_nhwc, ((0, 0), (padding, padding), (padding, padding), (0, 0)))
    else:
        xp = x_nhwc
    # im2col: kh*kw shifted views channel-concatenated -> lane-dense K = kh*kw*Cin
    cols = [xp[:, dy:dy + H, dx:dx + W, :] for dy in range(kh) for dx in range(kw)]
    patches = jnp.concatenate(cols, axis=-1) if len(cols) > 1 else cols[0]
    patches = patches.reshape(B * H * W, kh * kw * Cin)
    wm = w_hwio.reshape(kh * kw * Cin, Cout)
    out = matmul_bias_act(patches, wm, b, act=act, compute_dtype=compute_dtype)
    return out.reshape(B, H, W, Cout)


def ref_conv2d(x_nhwc, w_hwio, b, padding, act):
    """Pure-XLA reference conv (used only for the correctness check)."""
    out = jax.lax.conv_general_dilated(
        x_nhwc, w_hwio, window_strides=(1, 1),
        padding=((padding, padding), (padding, padding)),
        dimension_numbers=("NHWC", "HWIO", "NHWC"),
        precision=jax.lax.Precision.HIGHEST)
    out = out + jnp.asarray(b, out.dtype)
    return jax.nn.selu(out) if act == "selu" else out


# ----------------------------------------------------------------------------
# CBAM (channel + spatial attention) and the full network forward
# ----------------------------------------------------------------------------
def _cbam(x, p, conv_fn):
    # TODO(synk): CBAM is not defined in the provided spec; standard CBAM
    # (Woo et al. 2018) with an SELU MLP (is_SELU=True) is used here.
    avg = jnp.mean(x, axis=(1, 2))                      # (B, C)
    mx = jnp.max(x, axis=(1, 2))                        # (B, C)

    def mlp(v):                                         # tiny: plain JAX
        return jax.nn.selu(v @ p["ca_w1"] + p["ca_b1"]) @ p["ca_w2"] + p["ca_b2"]

    ca = jax.nn.sigmoid(mlp(avg) + mlp(mx))             # channel attention
    x = x * ca[:, None, None, :]

    s = jnp.concatenate([jnp.mean(x, axis=-1, keepdims=True),
                         jnp.max(x, axis=-1, keepdims=True)], axis=-1)
    sa = jax.nn.sigmoid(conv_fn(s, p["sa_w"], p["sa_b"], 3, "none"))
    return x * sa


def dfn_forward(x_nchw, params, conv_fn):
    """DynamicFilterNetworkv2 forward. x: (B, 6, H, W) -> (B, 6, H, W)."""
    x = jnp.transpose(x_nchw, (0, 2, 3, 1)).astype(jnp.float32)   # NHWC, C on lanes

    # BasicConv(6 -> 32): conv3x3 + SELU
    h = conv_fn(x, params["enc_w"], params["enc_b"], 1, "selu")

    # SADenseBlock(32, 5, 16): 5 x [conv3x3 + SELU -> CBAM -> concat]
    for lyr in params["dense"]:
        y = conv_fn(h, lyr["w"], lyr["b"], 1, "selu")
        y = _cbam(y, lyr, conv_fn)
        h = jnp.concatenate([h, y], axis=-1)            # dense connectivity

    # bottleneck 1x1 (112 -> 32) + SELU
    h = conv_fn(h, params["bott_w"], params["bott_b"], 0, "selu")

    # final 1x1 conv (32 -> 6), no activation
    out = conv_fn(h, params["out_w"], params["out_b"], 0, "none")
    return jnp.transpose(out, (0, 3, 1, 2))


def init_params(key):
    keys = iter(jax.random.split(key, 64))

    def conv(kh, kw, cin, cout):
        std = 1.0 / np.sqrt(kh * kw * cin)
        w = std * jax.random.normal(next(keys), (kh, kw, cin, cout), jnp.float32)
        return w, jnp.zeros((cout,), jnp.float32)

    p = {}
    p["enc_w"], p["enc_b"] = conv(3, 3, 6, 32)
    dense = []
    nch = 32
    for _ in range(5):                                   # nDenselayer = 5
        w, b = conv(3, 3, nch, 16)                       # growthRate = 16
        ca_w1 = (1.0 / np.sqrt(16)) * jax.random.normal(next(keys), (16, 8), jnp.float32)
        ca_w2 = (1.0 / np.sqrt(8)) * jax.random.normal(next(keys), (8, 16), jnp.float32)
        sa_w, sa_b = conv(7, 7, 2, 1)
        dense.append(dict(w=w, b=b,
                          ca_w1=ca_w1, ca_b1=jnp.zeros((8,), jnp.float32),
                          ca_w2=ca_w2, ca_b2=jnp.zeros((16,), jnp.float32),
                          sa_w=sa_w, sa_b=sa_b))
        nch += 16
    p["dense"] = dense
    p["bott_w"], p["bott_b"] = conv(1, 1, nch, 32)       # nch == 112
    p["out_w"], p["out_b"] = conv(1, 1, 32, 6)
    return p


# ----------------------------------------------------------------------------
if __name__ == "__main__":
    key = jax.random.PRNGKey(0)
    k_par, k_in = jax.random.split(key)
    params = init_params(k_par)
    x = jax.random.normal(k_in, (2, 6, 16, 16), jnp.float32)   # module expects 6 input channels

    # Default f32 compute path through the Pallas kernels.
    out = jax.block_until_ready(dfn_forward(x, params, pallas_conv2d))
    assert out.shape == (2, 6, 16, 16)

    # Pure-XLA reference with the identical weights / glue.
    ref = jax.block_until_ready(dfn_forward(x, params, ref_conv2d))
    np.testing.assert_allclose(np.asarray(out), np.asarray(ref), rtol=2e-2, atol=2e-2)

    # Optional bf16 compute fast path (per performance review): cast slab + W
    # to bf16, keep f32 MXU accumulation. Exercised once (no strict check).
    bf16_conv = functools.partial(pallas_conv2d, compute_dtype=jnp.bfloat16)
    out_bf16 = jax.block_until_ready(dfn_forward(x, params, bf16_conv))
    assert out_bf16.shape == (2, 6, 16, 16)

    print("KERNEL_OK")
</pallas_src>

<mosaic_0001>
module attributes {stable_mosaic.version = 11 : i64} {
  func.func @_gemm_bias_act_kernel(%arg0: i32, %arg1: memref<256x54xf32, #tpu.memory_space<vmem>>, %arg2: memref<54x32xf32, #tpu.memory_space<vmem>>, %arg3: memref<1x32xf32, #tpu.memory_space<vmem>>, %arg4: memref<256x32xf32, #tpu.memory_space<vmem>>) attributes {dimension_semantics = [#tpu.dimension_semantics<parallel>], iteration_bounds = array<i64: 2>, scalar_prefetch = 0 : i64, scratch_operands = 0 : i64, tpu.core_type = #tpu.core_type<tc>, window_params = [{transform_indices = @transform_0, window_bounds = array<i64: 256, 54>}, {pipeline_mode = #tpu.pipeline_mode<synchronous>, transform_indices = @transform_1, window_bounds = array<i64: 54, 32>}, {pipeline_mode = #tpu.pipeline_mode<synchronous>, transform_indices = @transform_2, window_bounds = array<i64: 1, 32>}, {transform_indices = @transform_3, window_bounds = array<i64: 256, 32>}]} {
    %c0 = arith.constant 0 : index
    %c0_0 = arith.constant 0 : index
    %0 = vector.load %arg1[%c0, %c0_0] : memref<256x54xf32, #tpu.memory_space<vmem>>, vector<256x54xf32>
    %c0_1 = arith.constant 0 : index
    %c0_2 = arith.constant 0 : index
    %1 = vector.load %arg2[%c0_1, %c0_2] : memref<54x32xf32, #tpu.memory_space<vmem>>, vector<54x32xf32>
    %cst = arith.constant dense<0.000000e+00> : vector<256x32xf32>
    %2 = tpu.matmul %0, %1, %cst {dimension_numbers = #tpu.dot_dimension_numbers<[1], [0], [0], [1], [0, 0, 1, 1], [], []>} : vector<256x54xf32>, vector<54x32xf32>, vector<256x32xf32> -> vector<256x32xf32>
    %c0_3 = arith.constant 0 : index
    %c0_4 = arith.constant 0 : index
    %3 = vector.load %arg3[%c0_3, %c0_4] : memref<1x32xf32, #tpu.memory_space<vmem>>, vector<1x32xf32>
    %4 = vector.broadcast %3 : vector<1x32xf32> to vector<256x32xf32>
    %5 = arith.addf %2, %4 : vector<256x32xf32>
    %cst_5 = arith.constant 0.000000e+00 : f32
    %6 = vector.broadcast %cst_5 : f32 to vector<256x32xf32>
    %7 = arith.minimumf %5, %6 : vector<256x32xf32>
    %8 = math.exp %7 : vector<256x32xf32>
    %cst_6 = arith.constant 1.000000e+00 : f32
    %9 = vector.broadcast %cst_6 : f32 to vector<256x32xf32>
    %10 = arith.subf %8, %9 : vector<256x32xf32>
    %cst_7 = arith.constant 1.67326319 : f32
    %11 = vector.broadcast %cst_7 : f32 to vector<256x32xf32>
    %12 = arith.mulf %11, %10 : vector<256x32xf32>
    %cst_8 = arith.constant 0.000000e+00 : f32
    %13 = vector.broadcast %cst_8 : f32 to vector<256x32xf32>
    %14 = arith.cmpf ogt, %5, %13 : vector<256x32xf32>
    %15 = arith.select %14, %5, %12 : vector<256x32xi1>, vector<256x32xf32>
    %cst_9 = arith.constant 1.05070102 : f32
    %16 = vector.broadcast %cst_9 : f32 to vector<256x32xf32>
    %17 = arith.mulf %16, %15 : vector<256x32xf32>
    %c0_10 = arith.constant 0 : index
    %c0_11 = arith.constant 0 : index
    %18 = vector.load %arg4[%c0_10, %c0_11] : memref<256x32xf32, #tpu.memory_space<vmem>>, vector<256x32xf32>
    tpu.vector_store %arg4[%c0_10, %c0_11], %17 {strides = array<i32>} : memref<256x32xf32, #tpu.memory_space<vmem>>, vector<256x32xf32>,
    return
  }
  func.func @transform_0(%arg0: i32) -> (i32, i32) {
    %c0_i32 = arith.constant 0 : i32
    %c0_i32_0 = arith.constant 0 : i32
    return %arg0, %c0_i32 : i32, i32
  }
  func.func @transform_1(%arg0: i32) -> (i32, i32) {
    %c0_i32 = arith.constant 0 : i32
    %c0_i32_0 = arith.constant 0 : i32
    %c0_i32_1 = arith.constant 0 : i32
    return %c0_i32, %c0_i32_0 : i32, i32
  }
  func.func @transform_2(%arg0: i32) -> (i32, i32) {
    %c0_i32 = arith.constant 0 : i32
    %c0_i32_0 = arith.constant 0 : i32
    %c0_i32_1 = arith.constant 0 : i32
    return %c0_i32, %c0_i32_0 : i32, i32
  }
  func.func @transform_3(%arg0: i32) -> (i32, i32) {
    %c0_i32 = arith.constant 0 : i32
    %c0_i32_0 = arith.constant 0 : i32
    return %arg0, %c0_i32 : i32, i32
  }
}

</mosaic_0001>

<bundles_post_ra>
// kernel: tpu_custom_call.1
= control target key start
LH: loop header
LB: loop body
LE: loop exit
PB: predicated region body
PF: predicated region fallthrough
CT: control target
= control target key end

     0   :  { %s1183_s12 = smov 0   ;;  %s1589_s0 = inlined_call_operand.vmem [shape: f32[512,54], index: 0, kind: input, shape index: {}]   ;;  %s1590_s1 = inlined_call_operand.vmem [shape: f32[54,32], index: 1, kind: input, shape index: {}]   ;;  %s1591_s2 = inlined_call_operand.vmem [shape: f32[1,32], index: 2, kind: input, shape index: {}]   ;;  %s1592_s3 = inlined_call_operand.vmem [shape: f32[512,32], index: 3, kind: output, shape index: {}]  }
   0x1 LB: > { %s891_s13 = sadd.s32 4294967295, %s1161_s12   ;;  %p895_p0 = scmp.ge.s32.totalorder %s1161_s12, 1  ;;  %s1161_s12 = sphi %s1183_s12, %s13_s12  }
   0x2   : > { %p138_p1 = scmp.lt.s32.totalorder %s1161_s12, 3 }
   0x4   : > { %p139_p2 = pnand %p895_p0, %p138_p1 }
   0x5   : > { %s896_s18 = sshll.u32 (!%p139_p2), %s891_s13, 5 }
   0x6   : > { %142 = sbr.rel (%p139_p2) target bundleno = 302 (0x12e), region = 32  ;;  %p163_p3 = scmp.lt.s32.totalorder (!%p139_p2), %s896_s18, 63 }
   0xb   : > { %v212_v0 = vld [vmem:[%s1590_s1 + $0x30] sm:$0x3f]  ;;  %vm317_vm0 = vcmask 1045504   ;;  %v211_v1 = vld [vmem:[%s1590_s1 + $0x28] sm:$0xff]  ;;  %v210_v2 = vld [vmem:[%s1590_s1 + $0x20] sm:$0xff]  ;;  %s1594_s18 = smov (!%p163_p3, %s896_s18), 63 }
   0xc   : > { %1007 = vmatprep.subr.msk.mxu0 %vm317_vm0, %v212_v0  ;;  %1069 = vmatprep.subr.msk.mxu1 %vm317_vm0, %v212_v0  ;;  %v209_v3 = vld [vmem:[%s1590_s1 + $0x18] sm:$0xff]  ;;  %v208_v4 = vld [vmem:[%s1590_s1 + $0x10] sm:$0xff]  ;;  %s897_s25 = sshll.u32 %s1594_s18, 3  ;;  %v207_v5 = vld [vmem:[%s1590_s1 + $0x8] sm:$0xff]  ;;  %vm220_vm1 = vcmask 441344   ;;  %vm802_vm3 = vcmask 261120  }
   0xd   : > { %1008 = vmatpush3.msk.msra.mxu0 %vm317_vm0, %v212_v0  ;;  %1076 = vmatpush3.msk.msra.mxu1 %vm317_vm0, %v212_v0  ;;  %s1217_s30 = scalar_lea.vmem %s1589_s0, %s897_s25  ;;  %v206_v6 = vld [vmem:[%s1590_s1] sm:$0xff]  ;;  %s1374_s10 = scalar_lea.vmem %s1592_s3, %s897_s25 }
   0xe   : > { %1009 = vmatprep.subr.mxu0 %v211_v1  ;;  %1070 = vmatprep.subr.mxu1 %v211_v1  ;;  %v174_v7 = vld [vmem:[%s1217_s30] sm:$0xff]  ;;  %v175_v9 = vld [vmem:[%s1217_s30 + $0x8] sm:$0xff]  ;;  %v176_v11 = vld [vmem:[%s1217_s30 + $0x10] sm:$0xff] }
   0xf   : > { %1010 = vmatpush3.msra.mxu0 %v211_v1  ;;  %1077 = vmatpush3.msra.mxu1 %v211_v1  ;;  %v190_v8 = vld [vmem:[%s1217_s30 + $0x80] sm:$0xff]  ;;  %v191_v10 = vld [vmem:[%s1217_s30 + $0x88] sm:$0xff]  ;;  %v192_v12 = vld [vmem:[%s1217_s30 + $0x90] sm:$0xff] }
  0x10   : > { %1011 = vmatprep.subr.mxu0 %v210_v2  ;;  %1071 = vmatprep.subr.mxu1 %v210_v2  ;;  %v177_v13 = vld [vmem:[%s1217_s30 + $0x18] sm:$0xff]  ;;  %v178_v15 = vld [vmem:[%s1217_s30 + $0x20] sm:$0xff]  ;;  %v179_v17 = vld [vmem:[%s1217_s30 + $0x28] sm:$0xff] }
  0x11   : > { %1012 = vmatpush3.msra.mxu0 %v210_v2  ;;  %1078 = vmatpush3.msra.mxu1 %v210_v2  ;;  %v193_v14 = vld [vmem:[%s1217_s30 + $0x98] sm:$0xff]  ;;  %v194_v16 = vld [vmem:[%s1217_s30 + $0xa0] sm:$0xff]  ;;  %v195_v18 = vld [vmem:[%s1217_s30 + $0xa8] sm:$0xff] }
  0x12   : > { %1013 = vmatprep.subr.mxu0 %v209_v3  ;;  %1072 = vmatprep.subr.mxu1 %v209_v3  ;;  %v180_v19 = vld [vmem:[%s1217_s30 + $0x30] sm:$0xff]  ;;  %v181_v21 = vld [vmem:[%s1217_s30 + $0x38] sm:$0xff]  ;;  %v182_v23 = vld [vmem:[%s1217_s30 + $0x40] sm:$0xff] }
  0x13   : > { %1014 = vmatpush3.msra.mxu0 %v209_v3  ;;  %1079 = vmatpush3.msra.mxu1 %v209_v3  ;;  %v196_v20 = vld [vmem:[%s1217_s30 + $0xb0] sm:$0xff]  ;;  %v197_v22 = vld [vmem:[%s1217_s30 + $0xb8] sm:$0xff]  ;;  %v198_v24 = vld [vmem:[%s1217_s30 + $0xc0] sm:$0xff] }
  0x14   : > { %1015 = vmatprep.subr.mxu0 %v208_v4  ;;  %1073 = vmatprep.subr.mxu1 %v208_v4  ;;  %v183_v25 = vld [vmem:[%s1217_s30 + $0x48] sm:$0xff]  ;;  %v184_v27 = vld [vmem:[%s1217_s30 + $0x50] sm:$0xff]  ;;  %v185_v29 = vld [vmem:[%s1217_s30 + $0x58] sm:$0xff] }
  0x15   : > { %1016 = vmatpush3.msra.mxu0 %v208_v4  ;;  %1080 = vmatpush3.msra.mxu1 %v208_v4  ;;  %v199_v26 = vld [vmem:[%s1217_s30 + $0xc8] sm:$0xff]  ;;  %v200_v28 = vld [vmem:[%s1217_s30 + $0xd0] sm:$0xff]  ;;  %v201_v30 = vld [vmem:[%s1217_s30 + $0xd8] sm:$0xff] }
  0x16   : > { %1017 = vmatprep.subr.mxu0 %v207_v5  ;;  %1074 = vmatprep.subr.mxu1 %v207_v5  ;;  %v186_v31 = vld [vmem:[%s1217_s30 + $0x60] sm:$0xff]  ;;  %v187_v33 = vld [vmem:[%s1217_s30 + $0x68] sm:$0xff]  ;;  %v188_v35 = vld [vmem:[%s1217_s30 + $0x70] sm:$0xff] }
  0x17   : > { %1018 = vmatpush3.msra.mxu0 %v207_v5  ;;  %1081 = vmatpush3.msra.mxu1 %v207_v5  ;;  %v202_v32 = vld [vmem:[%s1217_s30 + $0xe0] sm:$0xff]  ;;  %v203_v34 = vld [vmem:[%s1217_s30 + $0xe8] sm:$0xff]  ;;  %v204_v36 = vld [vmem:[%s1217_s30 + $0xf0] sm:$0xff] }
  0x18   : > { %1019 = vmatprep.subr.mxu0 %v206_v6  ;;  %1075 = vmatprep.subr.mxu1 %v206_v6  ;;  %v189_v37 = vld [vmem:[%s1217_s30 + $0x78] sm:$0xff]  ;;  %v1289_v39 = vld [vmem:[%s1591_s2] ss:$0 sm:$0xff] }
  0x19   : > { %1020 = vmatpush3.msra.mxu0 %v206_v6  ;;  %1082 = vmatpush3.msra.mxu1 %v206_v6  ;;  %v205_v38 = vld [vmem:[%s1217_s30 + $0xf8] sm:$0xff] }
  0x1a   : > { %1021 = vmatprep.mubr.msk.f32.mxu0 %vm220_vm1, %v174_v7  ;;  %1045 = vmatprep.mubr.msk.f32.mxu1 %vm220_vm1, %v190_v8 }
  0x1b   : > { %1022 = vmatmul.mubr.msk.f32.vlgmr.msra.gmra.mxu0 %vm220_vm1, %v175_v9  ;;  %1046 = vmatmul.mubr.msk.f32.vlgmr.msra.gmra.mxu1 %vm220_vm1, %v191_v10 }
  0x1c   : > { %1024 = vmatprep.mubr.msk.f32.mxu0 %vm220_vm1, %v176_v11  ;;  %1048 = vmatprep.mubr.msk.f32.mxu1 %vm220_vm1, %v192_v12 }
  0x1f   : > { %1025 = vmatmul.mubr.msk.f32.gmra.mxu0 %vm220_vm1, %v177_v13  ;;  %1049 = vmatmul.mubr.msk.f32.gmra.mxu1 %vm220_vm1, %v193_v14 }
  0x20   : > { %1027 = vmatprep.mubr.msk.f32.mxu0 %vm220_vm1, %v178_v15  ;;  %1051 = vmatprep.mubr.msk.f32.mxu1 %vm220_vm1, %v194_v16 }
  0x23   : > { %1028 = vmatmul.mubr.msk.f32.gmra.mxu0 %vm220_vm1, %v179_v17  ;;  %1052 = vmatmul.mubr.msk.f32.gmra.mxu1 %vm220_vm1, %v195_v18 }
  0x24   : > { %1030 = vmatprep.mubr.msk.f32.mxu0 %vm220_vm1, %v180_v19  ;;  %1054 = vmatprep.mubr.msk.f32.mxu1 %vm220_vm1, %v196_v20 }
  0x27   : > { %1031 = vmatmul.mubr.msk.f32.gmra.mxu0 %vm220_vm1, %v181_v21  ;;  %1055 = vmatmul.mubr.msk.f32.gmra.mxu1 %vm220_vm1, %v197_v22 }
  0x28   : > { %1033 = vmatprep.mubr.msk.f32.mxu0 %vm220_vm1, %v182_v23  ;;  %1057 = vmatprep.mubr.msk.f32.mxu1 %vm220_vm1, %v198_v24 }
  0x2b   : > { %1034 = vmatmul.mubr.msk.f32.gmra.mxu0 %vm220_vm1, %v183_v25  ;;  %1058 = vmatmul.mubr.msk.f32.gmra.mxu1 %vm220_vm1, %v199_v26 }
  0x2c   : > { %1036 = vmatprep.mubr.msk.f32.mxu0 %vm220_vm1, %v184_v27  ;;  %1060 = vmatprep.mubr.msk.f32.mxu1 %vm220_vm1, %v200_v28 }
  0x2f   : > { %1037 = vmatmul.mubr.msk.f32.gmra.mxu0 %vm220_vm1, %v185_v29  ;;  %1061 = vmatmul.mubr.msk.f32.gmra.mxu1 %vm220_vm1, %v201_v30 }
  0x30   : > { %1039 = vmatprep.mubr.msk.f32.mxu0 %vm220_vm1, %v186_v31  ;;  %1063 = vmatprep.mubr.msk.f32.mxu1 %vm220_vm1, %v202_v32 }
  0x33   : > { %1040 = vmatmul.mubr.msk.f32.gmra.mxu0 %vm220_vm1, %v187_v33  ;;  %1064 = vmatmul.mubr.msk.f32.gmra.mxu1 %vm220_vm1, %v203_v34 }
  0x34   : > { %1042 = vmatprep.mubr.msk.f32.mxu0 %vm220_vm1, %v188_v35  ;;  %1066 = vmatprep.mubr.msk.f32.mxu1 %vm220_vm1, %v204_v36 }
  0x37   : > { %1043 = vmatmul.mubr.msk.f32.gmra.mxu0 %vm220_vm1, %v189_v37  ;;  %1067 = vmatmul.mubr.msk.f32.gmra.mxu1 %vm220_vm1, %v205_v38 }
  0xdb   : > { %v1023_v40 = vpop.f32.mrf.mxu0  ;;  %v1047_v41 = vpop.f32.mrf.mxu1 }
  0xdc   : > { %v1292_v42 = vadd.f32 %v1023_v40, %v1289_v39  ;;  %v1295_v43 = vadd.f32 %v1047_v41, %v1289_v39 }
  0xdd   : > { %v387_v44 = vpop.f32.mrf.mxu0  ;;  %v467_v45 = vpop.f32.mrf.mxu1 }
  0xde   : > { %v547_v46 = vmin.f32 %v1292_v42, 0.0  ;;  %v563_v47 = vmin.f32 %v1295_v43, 0.0  ;;  %v1300_v48 = vadd.f32 %v1289_v39, %v387_v44  ;;  %v1303_v49 = vadd.f32 %v1289_v39, %v467_v45 }
  0xdf   : > { %v1026_v50 = vpop.f32.mrf.mxu0  ;;  %v1050_v51 = vpop.f32.mrf.mxu1  ;;  %vm707_vm2 = vcmp.gt.f32.partialorder %v1292_v42, 0.0  ;;  %vm723_vm4 = vcmp.gt.f32.partialorder %v1295_v43, 0.0 }
  0xe0   : > { %v580_v52 = vmul.f32 1.442695, %v547_v46  ;;  %v612_v53 = vmul.f32 1.442695, %v563_v47  ;;  %v1306_v54 = vadd.f32 %v1026_v50, %v1289_v39  ;;  %v1309_v55 = vadd.f32 %v1050_v51, %v1289_v39 }
  0xe1   : > { %v546_v56 = vmin.f32 %v1300_v48, 0.0  ;;  %v562_v57 = vmin.f32 %v1303_v49, 0.0  ;;  %v397_v58 = vpop.f32.mrf.mxu0  ;;  %v477_v59 = vpop.f32.mrf.mxu1  ;;  %vm706_vm5 = vcmp.gt.f32.partialorder %v1300_v48, 0.0  ;;  %vm722_vm6 = vcmp.gt.f32.partialorder %v1303_v49, 0.0 }
  0xe2   : > { %1091 = vpow2.f32 %v580_v52  ;;  %v549_v60 = vmin.f32 %v1306_v54, 0.0  ;;  %v565_v61 = vmin.f32 %v1309_v55, 0.0  ;;  %v1316_v4 = vadd.f32 %v1289_v39, %v397_v58 }
  0xe3   : > { %1093 = vpow2.f32 %v612_v53  ;;  %v578_v62 = vmul.f32 1.442695, %v546_v56  ;;  %v610_v63 = vmul.f32 1.442695, %v562_v57  ;;  %v1029_v0 = vpop.f32.mrf.mxu0  ;;  %v1053_v1 = vpop.f32.mrf.mxu1  ;;  %v1319_v5 = vadd.f32 %v1289_v39, %v477_v59 }
  0xe4   : > { %v584_v2 = vmul.f32 1.442695, %v549_v60  ;;  %v616_v3 = vmul.f32 1.442695, %v565_v61  ;;  %v1322_v6 = vadd.f32 %v1029_v0, %v1289_v39  ;;  %v1325_v7 = vadd.f32 %v1053_v1, %v1289_v39 }
  0xe5   : > { %1095 = vpow2.f32 %v578_v62  ;;  %v407_v8 = vpop.f32.mrf.mxu0  ;;  %v487_v9 = vpop.f32.mrf.mxu1  ;;  %v548_v10 = vmin.f32 %v1316_v4, 0.0  ;;  %v564_v11 = vmin.f32 %v1319_v5, 0.0  ;;  %vm709_vm7 = vcmp.gt.f32.partialorder %v1306_v54, 0.0 }
  0xe6   : > { %1097 = vpow2.f32 %v610_v63  ;;  %v551_v12 = vmin.f32 %v1322_v6, 0.0  ;;  %v567_v17 = vmin.f32 %v1325_v7, 0.0  ;;  %v1332_v19 = vadd.f32 %v1289_v39, %v407_v8 }
  0xe7   : > { %1099 = vpow2.f32 %v584_v2  ;;  %v1032_v13 = vpop.f32.mrf.mxu0  ;;  %v1056_v14 = vpop.f32.mrf.mxu1  ;;  %v582_v15 = vmul.f32 1.442695, %v548_v10  ;;  %v614_v16 = vmul.f32 1.442695, %v564_v11  ;;  %v1335_v20 = vadd.f32 %v1289_v39, %v487_v9 }
  0xe8   : > { %1101 = vpow2.f32 %v616_v3  ;;  %v588_v18 = vmul.f32 1.442695, %v551_v12  ;;  %v620_v22 = vmul.f32 1.442695, %v567_v17  ;;  %v1338_v23 = vadd.f32 %v1032_v13, %v1289_v39 }
  0xe9   : > { %v417_v21 = vpop.f32.mrf.mxu0  ;;  %1103 = vpow2.f32 %v582_v15  ;;  %v1341_v24 = vadd.f32 %v1056_v14, %v1289_v39  ;;  %v550_v25 = vmin.f32 %v1332_v19, 0.0  ;;  %v566_v26 = vmin.f32 %v1335_v20, 0.0  ;;  %v497_v27 = vpop.f32.mrf.mxu1 }
  0xea   : > { %1105 = vpow2.f32 %v614_v16  ;;  %v553_v28 = vmin.f32 %v1338_v23, 0.0  ;;  %v1351_v34 = vadd.f32 %v1289_v39, %v417_v21  ;;  %v1354_v35 = vadd.f32 %v1289_v39, %v497_v27 }
  0xeb   : > { %1107 = vpow2.f32 %v588_v18  ;;  %v1035_v29 = vpop.f32.mrf.mxu0  ;;  %v586_v30 = vmul.f32 1.442695, %v550_v25  ;;  %v618_v31 = vmul.f32 1.442695, %v566_v26  ;;  %v569_v32 = vmin.f32 %v1341_v24, 0.0  ;;  %v1059_v45 = vpop.f32.mrf.mxu1 }
  0xec   : > { %1109 = vpow2.f32 %v620_v22  ;;  %v592_v33 = vmul.f32 1.442695, %v553_v28  ;;  %v1358_v38 = vadd.f32 %v1035_v29, %v1289_v39  ;;  %v552_v44 = vmin.f32 %v1351_v34, 0.0 }
  0xed   : > { %1111 = vpow2.f32 %v586_v30  ;;  %v624_v37 = vmul.f32 1.442695, %v569_v32  ;;  %vm725_vm8 = vcmp.gt.f32.partialorder %v1309_v55, 0.0  ;;  %v568_v47 = vmin.f32 %v1354_v35, 0.0  ;;  %v427_v28 = vpop.f32.mrf.mxu0  ;;  %v507_v29 = vpop.f32.mrf.mxu1 }
  0xee   : > { %1113 = vpow2.f32 %v618_v31  ;;  %v590_v52 = vmul.f32 1.442695, %v552_v44  ;;  %v555_v53 = vmin.f32 %v1358_v38, 0.0  ;;  %vm708_vm9 = vcmp.gt.f32.partialorder %v1316_v4, 0.0 }
  0xef   : > { %v1092_v36 = vpop.eup %1091  ;;  %1115 = vpow2.f32 %v592_v33  ;;  %v622_v59 = vmul.f32 1.442695, %v568_v47  ;;  %v1367_v60 = vadd.f32 %v1059_v45, %v1289_v39  ;;  %vm724_vm10 = vcmp.gt.f32.partialorder %v1319_v5, 0.0 }
  0xf0   : > { %v1094_v40 = vpop.eup %1093  ;;  %v935_v41 = vadd.f32 -1.0, %v1092_v36  ;;  %1117 = vpow2.f32 %v624_v37  ;;  %v596_v0 = vmul.f32 1.442695, %v555_v53  ;;  %vm711_vm11 = vcmp.gt.f32.partialorder %v1322_v6, 0.0 }
  0xf1   : > { %v951_v46 = vadd.f32 -1.0, %v1094_v40  ;;  %1119 = vpow2.f32 %v590_v52  ;;  %vm727_vm12 = vcmp.gt.f32.partialorder %v1325_v7, 0.0  ;;  %vm710_vm13 = vcmp.gt.f32.partialorder %v1332_v19, 0.0  ;;  %v1038_v52 = vpop.f32.mrf.mxu0 }
  0xf2   : > { %v1096_v50 = vpop.eup %1095  ;;  %v675_v51 = vmul.f32 1.6732632, %v935_v41  ;;  %1121 = vpow2.f32 %v622_v59  ;;  %vm726_vm14 = vcmp.gt.f32.partialorder %v1335_v20, 0.0  ;;  %vm713_vm15 = vcmp.gt.f32.partialorder %v1338_v23, 0.0 }
  0xf3   : > { %v1098_v56 = vpop.eup %1097  ;;  %v691_v57 = vmul.f32 1.6732632, %v951_v46  ;;  %v934_v58 = vadd.f32 -1.0, %v1096_v50  ;;  %1123 = vpow2.f32 %v596_v0  ;;  %vm729_vm0 = vcmp.gt.f32.partialorder %v1341_v24, 0.0 }
  0xf4   : > { %v1100_v61 = vpop.eup %1099  ;;  %v739_v62 = vsel %vm707_vm2, %v1292_v42, %v675_v51  ;;  %v950_v63 = vadd.f32 -1.0, %v1098_v56  ;;  %vm712_vm1 = vcmp.gt.f32.partialorder %v1351_v34, 0.0  ;;  %vm728_vm2 = vcmp.gt.f32.partialorder %v1354_v35, 0.0 }
  0xf5   : > { %v1102_v1 = vpop.eup %1101  ;;  %v771_v2 = vmul.f32 1.050701, %v739_v62  ;;  %v755_v3 = vsel %vm723_vm4, %v1295_v43, %v691_v57  ;;  %v674_v8 = vmul.f32 1.6732632, %v934_v58  ;;  %v937_v9 = vadd.f32 -1.0, %v1100_v61 }
  0xf6   : > { %v787_v10 = vmul.f32 1.050701, %v755_v3  ;;  %v690_v11 = vmul.f32 1.6732632, %v950_v63  ;;  %v953_v42 = vadd.f32 -1.0, %v1102_v1  ;;  %v1104_v12 = vpop.eup %1103  ;;  %v571_v43 = vmin.f32 %v1367_v60, 0.0 }
  0xf7   : > { %804 = vst.msk [vmem:[%s1374_s10 + $0x8] sm:$0xff] %vm802_vm3, %v771_v2  ;;  %v738_v13 = vsel %vm706_vm5, %v1300_v48, %v674_v8  ;;  %v677_v14 = vmul.f32 1.6732632, %v937_v9  ;;  %v1106_v15 = vpop.eup %1105  ;;  %v936_v21 = vadd.f32 -1.0, %v1104_v12  ;;  %vm715_vm4 = vcmp.gt.f32.partialorder %v1358_v38, 0.0 }
  0xf8   : > { %820 = vst.msk [vmem:[%s1374_s10 + $0x88] sm:$0xff] %vm802_vm3, %v787_v10  ;;  %v770_v16 = vmul.f32 1.050701, %v738_v13  ;;  %v754_v17 = vsel %vm722_vm6, %v1303_v49, %v690_v11  ;;  %v693_v18 = vmul.f32 1.6732632, %v953_v42  ;;  %v1108_v22 = vpop.eup %1107  ;;  %v952_v26 = vadd.f32 -1.0, %v1106_v15  ;;  %v437_v11 = vpop.f32.mrf.mxu0 }
  0xf9   : > { %v786_v48 = vmul.f32 1.050701, %v754_v17  ;;  %v741_v25 = vsel %vm709_vm7, %v1306_v54, %v677_v14  ;;  %v628_v27 = vmul.f32 1.442695, %v571_v43  ;;  %v1110_v30 = vpop.eup %1109  ;;  %v676_v32 = vmul.f32 1.6732632, %v936_v21 }
  0xfa   : > { %803 = vst.msk [vmem:[%s1374_s10] sm:$0xff] %vm802_vm3, %v770_v16  ;;  %v773_v49 = vmul.f32 1.050701, %v741_v25  ;;  %v757_v31 = vsel %vm725_vm8, %v1309_v55, %v693_v18  ;;  %v939_v33 = vadd.f32 -1.0, %v1108_v22  ;;  %v692_v36 = vmul.f32 1.6732632, %v952_v26  ;;  %v1112_v40 = vpop.eup %1111 }
  0xfb   : > { %819 = vst.msk [vmem:[%s1374_s10 + $0x80] sm:$0xff] %vm802_vm3, %v786_v48  ;;  %v789_v54 = vmul.f32 1.050701, %v757_v31  ;;  %v955_v37 = vadd.f32 -1.0, %v1110_v30  ;;  %1125 = vpow2.f32 %v628_v27  ;;  %v740_v41 = vsel %vm708_vm9, %v1316_v4, %v676_v32  ;;  %v1114_v45 = vpop.eup %1113  ;;  %v1062_v4 = vpop.f32.mrf.mxu1 }
  0xfc   : > { %806 = vst.msk [vmem:[%s1374_s10 + $0x18] sm:$0xff] %vm802_vm3, %v773_v49  ;;  %v679_v44 = vmul.f32 1.6732632, %v939_v33  ;;  %v1416_v55 = vadd.f32 %v1289_v39, %v427_v28  ;;  %v772_v46 = vmul.f32 1.050701, %v740_v41  ;;  %v756_v47 = vsel %vm724_vm10, %v1319_v5, %v692_v36  ;;  %v1116_v53 = vpop.eup %1115  ;;  %v1041_v27 = vpop.f32.mrf.mxu0 }
  0xfd   : > { %822 = vst.msk [vmem:[%s1374_s10 + $0x98] sm:$0xff] %vm802_vm3, %v789_v54  ;;  %v695_v50 = vmul.f32 1.6732632, %v955_v37  ;;  %v938_v51 = vadd.f32 -1.0, %v1112_v40  ;;  %v788_v56 = vmul.f32 1.050701, %v756_v47  ;;  %v1118_v61 = vpop.eup %1117  ;;  %v1441_v10 = vadd.f32 %v1289_v39, %v507_v29  ;;  %v517_v42 = vpop.f32.mrf.mxu1 }
  0xfe   : > { %v743_v57 = vsel %vm711_vm11, %v1322_v6, %v679_v44  ;;  %v954_v58 = vadd.f32 -1.0, %v1114_v45  ;;  %v554_v59 = vmin.f32 %v1416_v55, 0.0  ;;  %805 = vst.msk [vmem:[%s1374_s10 + $0x10] sm:$0xff] %vm802_vm3, %v772_v46  ;;  %v941_v0 = vadd.f32 -1.0, %v1116_v53  ;;  %v1120_v6 = vpop.eup %1119  ;;  %v447_v45 = vpop.f32.mrf.mxu0 }
  0xff   : > { %v775_v62 = vmul.f32 1.050701, %v743_v57  ;;  %v759_v5 = vsel %vm727_vm12, %v1325_v7, %v695_v50  ;;  %v678_v63 = vmul.f32 1.6732632, %v938_v51  ;;  %821 = vst.msk [vmem:[%s1374_s10 + $0x90] sm:$0xff] %vm802_vm3, %v788_v56  ;;  %v957_v3 = vadd.f32 -1.0, %v1118_v61  ;;  %v1122_v15 = vpop.eup %1121  ;;  %v1065_v28 = vpop.f32.mrf.mxu1 }
 0x100   : > { %v791_v1 = vmul.f32 1.050701, %v759_v5  ;;  %v694_v2 = vmul.f32 1.6732632, %v954_v58  ;;  %v681_v9 = vmul.f32 1.6732632, %v941_v0  ;;  %v1124_v18 = vpop.eup %1123  ;;  %v1469_v49 = vadd.f32 %v1062_v4, %v1289_v39  ;;  %v1044_v61 = vpop.f32.mrf.mxu0 }
 0x101   : > { %808 = vst.msk [vmem:[%s1374_s10 + $0x28] sm:$0xff] %vm802_vm3, %v775_v62  ;;  %v742_v8 = vsel %vm710_vm13, %v1332_v19, %v678_v63  ;;  %v594_v7 = vmul.f32 1.442695, %v554_v59  ;;  %v697_v14 = vmul.f32 1.6732632, %v957_v3  ;;  %v940_v43 = vadd.f32 -1.0, %v1120_v6  ;;  %v527_v46 = vpop.f32.mrf.mxu1 }
 0x102   : > { %824 = vst.msk [vmem:[%s1374_s10 + $0xa8] sm:$0xff] %vm802_vm3, %v791_v1  ;;  %v774_v12 = vmul.f32 1.050701, %v742_v8  ;;  %v758_v13 = vsel %vm726_vm14, %v1335_v20, %v694_v2  ;;  %v745_v16 = vsel %vm713_vm15, %v1338_v23, %v681_v9  ;;  %v570_v17 = vmin.f32 %v1441_v10, 0.0 }
 0x103   : > { %v790_v19 = vmul.f32 1.050701, %v758_v13  ;;  %1127 = vpow2.f32 %v594_v7  ;;  %v777_v21 = vmul.f32 1.050701, %v745_v16  ;;  %v761_v20 = vsel %vm729_vm0, %v1341_v24, %v697_v14  ;;  %v1068_v62 = vpop.f32.mrf.mxu1 }
 0x104   : > { %807 = vst.msk [vmem:[%s1374_s10 + $0x20] sm:$0xff] %vm802_vm3, %v774_v12  ;;  %v680_v22 = vmul.f32 1.6732632, %v940_v43  ;;  %v956_v48 = vadd.f32 -1.0, %v1122_v15  ;;  %v793_v25 = vmul.f32 1.050701, %v761_v20  ;;  %v1466_v24 = vadd.f32 %v1038_v52, %v1289_v39 }
 0x105   : > { %823 = vst.msk [vmem:[%s1374_s10 + $0xa0] sm:$0xff] %vm802_vm3, %v790_v19  ;;  %v943_v23 = vadd.f32 -1.0, %v1124_v18  ;;  %v626_v26 = vmul.f32 1.442695, %v570_v17  ;;  %810 = vst.msk [vmem:[%s1374_s10 + $0x38] sm:$0xff] %vm802_vm3, %v777_v21  ;;  %v1474_v33 = vadd.f32 %v1289_v39, %v437_v11  ;;  %v573_v37 = vmin.f32 %v1469_v49, 0.0  ;;  %v457_v11 = vpop.f32.mrf.mxu0 }
 0x106   : > { %v744_v29 = vsel %vm712_vm1, %v1351_v34, %v680_v22  ;;  %v696_v30 = vmul.f32 1.6732632, %v956_v48  ;;  %826 = vst.msk [vmem:[%s1374_s10 + $0xb8] sm:$0xff] %vm802_vm3, %v793_v25  ;;  %v557_v36 = vmin.f32 %v1466_v24, 0.0  ;;  %v1492_v53 = vadd.f32 %v1041_v27, %v1289_v39 }
 0x107   : > { %v776_v31 = vmul.f32 1.050701, %v744_v29  ;;  %v683_v32 = vmul.f32 1.6732632, %v943_v23  ;;  %1129 = vpow2.f32 %v626_v26  ;;  %v632_v51 = vmul.f32 1.442695, %v573_v37 }
 0x108   : > { %v1126_v54 = vpop.eup %1125  ;;  %v760_v34 = vsel %vm728_vm2, %v1354_v35, %v696_v30  ;;  %v600_v50 = vmul.f32 1.442695, %v557_v36  ;;  %v1486_v35 = vadd.f32 %v1289_v39, %v517_v42  ;;  %v556_v4 = vmin.f32 %v1474_v33, 0.0  ;;  %v537_v42 = vpop.f32.mrf.mxu1 }
 0x109   : > { %809 = vst.msk [vmem:[%s1374_s10 + $0x30] sm:$0xff] %vm802_vm3, %v776_v31  ;;  %v792_v40 = vmul.f32 1.050701, %v760_v34  ;;  %v747_v41 = vsel %vm715_vm4, %v1358_v38, %v683_v32  ;;  %v959_v44 = vadd.f32 -1.0, %v1126_v54  ;;  %vm731_vm5 = vcmp.gt.f32.partialorder %v1367_v60, 0.0 }
 0x10a   : > { %v779_v47 = vmul.f32 1.050701, %v747_v41  ;;  %1131 = vpow2.f32 %v600_v50  ;;  %v572_v38 = vmin.f32 %v1486_v35, 0.0  ;;  %v1499_v56 = vadd.f32 %v1065_v28, %v1289_v39 }
 0x10b   : > { %825 = vst.msk [vmem:[%s1374_s10 + $0xb0] sm:$0xff] %vm802_vm3, %v792_v40  ;;  %v699_v52 = vmul.f32 1.6732632, %v959_v44  ;;  %1133 = vpow2.f32 %v632_v51  ;;  %v598_v58 = vmul.f32 1.442695, %v556_v4  ;;  %v559_v59 = vmin.f32 %v1492_v53, 0.0 }
 0x10c   : > { %812 = vst.msk [vmem:[%s1374_s10 + $0x48] sm:$0xff] %vm802_vm3, %v779_v47  ;;  %v630_v63 = vmul.f32 1.442695, %v572_v38  ;;  %v575_v0 = vmin.f32 %v1499_v56, 0.0  ;;  %v1505_v2 = vadd.f32 %v1289_v39, %v447_v45  ;;  %v1510_v6 = vadd.f32 %v1289_v39, %v527_v46 }
 0x10d   : > { %v763_v57 = vsel %vm731_vm5, %v1367_v60, %v699_v52  ;;  %1135 = vpow2.f32 %v598_v58  ;;  %v604_v1 = vmul.f32 1.442695, %v559_v59  ;;  %v1513_v8 = vadd.f32 %v1044_v61, %v1289_v39 }
 0x10e   : > { %v795_v5 = vmul.f32 1.050701, %v763_v57  ;;  %1137 = vpow2.f32 %v630_v63  ;;  %v636_v60 = vmul.f32 1.442695, %v575_v0  ;;  %v558_v7 = vmin.f32 %v1505_v2, 0.0 }
 0x10f   : > { %1139 = vpow2.f32 %v604_v1  ;;  %v574_v12 = vmin.f32 %v1510_v6, 0.0  ;;  %v561_v13 = vmin.f32 %v1513_v8, 0.0  ;;  %vm714_vm6 = vcmp.gt.f32.partialorder %v1416_v55, 0.0 }
 0x110   : > { %v1128_v3 = vpop.eup %1127  ;;  %828 = vst.msk [vmem:[%s1374_s10 + $0xc8] sm:$0xff] %vm802_vm3, %v795_v5  ;;  %1141 = vpow2.f32 %v636_v60  ;;  %v602_v43 = vmul.f32 1.442695, %v558_v7  ;;  %v1520_v15 = vadd.f32 %v1068_v62, %v1289_v39  ;;  %v1523_v18 = vadd.f32 %v1289_v39, %v457_v11 }
 0x111   : > { %v942_v9 = vadd.f32 -1.0, %v1128_v3  ;;  %v634_v16 = vmul.f32 1.442695, %v574_v12  ;;  %v608_v17 = vmul.f32 1.442695, %v561_v13  ;;  %v1526_v21 = vadd.f32 %v1289_v39, %v537_v42 }
 0x112   : > { %1143 = vpow2.f32 %v602_v43  ;;  %v577_v48 = vmin.f32 %v1520_v15, 0.0  ;;  %v560_v23 = vmin.f32 %v1523_v18, 0.0  ;;  %vm730_vm7 = vcmp.gt.f32.partialorder %v1441_v10, 0.0 }
 0x113   : > { %v682_v14 = vmul.f32 1.6732632, %v942_v9  ;;  %1145 = vpow2.f32 %v634_v16  ;;  %v576_v28 = vmin.f32 %v1526_v21, 0.0  ;;  %vm717_vm8 = vcmp.gt.f32.partialorder %v1466_v24, 0.0 }
 0x114   : > { %v1130_v19 = vpop.eup %1129  ;;  %1147 = vpow2.f32 %v608_v17  ;;  %v640_v27 = vmul.f32 1.442695, %v577_v48  ;;  %v606_v39 = vmul.f32 1.442695, %v560_v23  ;;  %vm733_vm9 = vcmp.gt.f32.partialorder %v1469_v49, 0.0 }
 0x115   : > { %v746_v20 = vsel %vm714_vm6, %v1416_v55, %v682_v14  ;;  %v958_v22 = vadd.f32 -1.0, %v1130_v19  ;;  %v638_v54 = vmul.f32 1.442695, %v576_v28  ;;  %vm716_vm10 = vcmp.gt.f32.partialorder %v1474_v33, 0.0 }
 0x116   : > { %v778_v25 = vmul.f32 1.050701, %v746_v20  ;;  %1149 = vpow2.f32 %v640_v27  ;;  %vm732_vm11 = vcmp.gt.f32.partialorder %v1486_v35, 0.0  ;;  %vm719_vm12 = vcmp.gt.f32.partialorder %v1492_v53, 0.0 }
 0x117   : > { %v698_v26 = vmul.f32 1.6732632, %v958_v22  ;;  %v1132_v55 = vpop.eup %1131  ;;  %1151 = vpow2.f32 %v606_v39  ;;  %vm735_vm13 = vcmp.gt.f32.partialorder %v1499_v56, 0.0  ;;  %vm718_vm14 = vcmp.gt.f32.partialorder %v1505_v2, 0.0 }
 0x118   : > { %811 = vst.msk [vmem:[%s1374_s10 + $0x40] sm:$0xff] %vm802_vm3, %v778_v25  ;;  %v1134_v30 = vpop.eup %1133  ;;  %v945_v32 = vadd.f32 -1.0, %v1132_v55  ;;  %1153 = vpow2.f32 %v638_v54  ;;  %vm734_vm15 = vcmp.gt.f32.partialorder %v1510_v6, 0.0  ;;  %vm721_vm0 = vcmp.gt.f32.partialorder %v1513_v8, 0.0 }
 0x119   : > { %v762_v29 = vsel %vm730_vm7, %v1441_v10, %v698_v26  ;;  %v961_v34 = vadd.f32 -1.0, %v1134_v30  ;;  %vm737_vm1 = vcmp.gt.f32.partialorder %v1520_v15, 0.0  ;;  %vm720_vm2 = vcmp.gt.f32.partialorder %v1523_v18, 0.0 }
 0x11a   : > { %v794_v31 = vmul.f32 1.050701, %v762_v29  ;;  %v1136_v36 = vpop.eup %1135  ;;  %v685_v37 = vmul.f32 1.6732632, %v945_v32  ;;  %vm736_vm4 = vcmp.gt.f32.partialorder %v1526_v21, 0.0 }
 0x11b   : > { %v1138_v40 = vpop.eup %1137  ;;  %v701_v41 = vmul.f32 1.6732632, %v961_v34  ;;  %v944_v44 = vadd.f32 -1.0, %v1136_v36 }
 0x11c   : > { %827 = vst.msk [vmem:[%s1374_s10 + $0xc0] sm:$0xff] %vm802_vm3, %v794_v31  ;;  %v1140_v45 = vpop.eup %1139  ;;  %v749_v10 = vsel %vm717_vm8, %v1466_v24, %v685_v37  ;;  %v960_v46 = vadd.f32 -1.0, %v1138_v40 }
 0x11d   : > { %v1142_v47 = vpop.eup %1141  ;;  %v781_v50 = vmul.f32 1.050701, %v749_v10  ;;  %v765_v51 = vsel %vm733_vm9, %v1469_v49, %v701_v41  ;;  %v684_v52 = vmul.f32 1.6732632, %v944_v44  ;;  %v947_v4 = vadd.f32 -1.0, %v1140_v45 }
 0x11e   : > { %v797_v38 = vmul.f32 1.050701, %v765_v51  ;;  %v700_v57 = vmul.f32 1.6732632, %v960_v46  ;;  %v963_v58 = vadd.f32 -1.0, %v1142_v47 }
 0x11f   : > { %814 = vst.msk [vmem:[%s1374_s10 + $0x58] sm:$0xff] %vm802_vm3, %v781_v50  ;;  %v748_v24 = vsel %vm716_vm10, %v1474_v33, %v684_v52  ;;  %v687_v59 = vmul.f32 1.6732632, %v947_v4  ;;  %v1144_v61 = vpop.eup %1143 }
 0x120   : > { %830 = vst.msk [vmem:[%s1374_s10 + $0xd8] sm:$0xff] %vm802_vm3, %v797_v38  ;;  %v780_v49 = vmul.f32 1.050701, %v748_v24  ;;  %v764_v62 = vsel %vm732_vm11, %v1486_v35, %v700_v57  ;;  %v703_v5 = vmul.f32 1.6732632, %v963_v58  ;;  %v1146_v63 = vpop.eup %1145  ;;  %v946_v33 = vadd.f32 -1.0, %v1144_v61 }
 0x121   : > { %v796_v0 = vmul.f32 1.050701, %v764_v62  ;;  %v751_v1 = vsel %vm719_vm12, %v1492_v53, %v687_v59  ;;  %v1148_v3 = vpop.eup %1147  ;;  %v962_v7 = vadd.f32 -1.0, %v1146_v63 }
 0x122   : > { %813 = vst.msk [vmem:[%s1374_s10 + $0x50] sm:$0xff] %vm802_vm3, %v780_v49  ;;  %v783_v60 = vmul.f32 1.050701, %v751_v1  ;;  %v767_v9 = vsel %vm735_vm13, %v1499_v56, %v703_v5  ;;  %v686_v11 = vmul.f32 1.6732632, %v946_v33  ;;  %v949_v42 = vadd.f32 -1.0, %v1148_v3 }
 0x123   : > { %829 = vst.msk [vmem:[%s1374_s10 + $0xd0] sm:$0xff] %vm802_vm3, %v796_v0  ;;  %v799_v35 = vmul.f32 1.050701, %v767_v9  ;;  %v1150_v12 = vpop.eup %1149  ;;  %v702_v53 = vmul.f32 1.6732632, %v962_v7 }
 0x124   : > { %816 = vst.msk [vmem:[%s1374_s10 + $0x68] sm:$0xff] %vm802_vm3, %v783_v60  ;;  %v1152_v13 = vpop.eup %1151  ;;  %v750_v14 = vsel %vm718_vm14, %v1505_v2, %v686_v11  ;;  %v689_v56 = vmul.f32 1.6732632, %v949_v42  ;;  %v965_v43 = vadd.f32 -1.0, %v1150_v12 }
 0x125   : > { %832 = vst.msk [vmem:[%s1374_s10 + $0xe8] sm:$0xff] %vm802_vm3, %v799_v35  ;;  %v782_v19 = vmul.f32 1.050701, %v750_v14  ;;  %v766_v16 = vsel %vm734_vm15, %v1510_v6, %v702_v53  ;;  %v948_v17 = vadd.f32 -1.0, %v1152_v13  ;;  %v1154_v20 = vpop.eup %1153 }
 0x126   : > { %v798_v22 = vmul.f32 1.050701, %v766_v16  ;;  %v753_v48 = vsel %vm721_vm0, %v1513_v8, %v689_v56  ;;  %v705_v25 = vmul.f32 1.6732632, %v965_v43  ;;  %v964_v26 = vadd.f32 -1.0, %v1154_v20 }
 0x127   : > { %815 = vst.msk [vmem:[%s1374_s10 + $0x60] sm:$0xff] %vm802_vm3, %v782_v19  ;;  %v785_v2 = vmul.f32 1.050701, %v753_v48  ;;  %v688_v23 = vmul.f32 1.6732632, %v948_v17 }
 0x128   : > { %831 = vst.msk [vmem:[%s1374_s10 + $0xe0] sm:$0xff] %vm802_vm3, %v798_v22  ;;  %v769_v6 = vsel %vm737_vm1, %v1520_v15, %v705_v25  ;;  %v704_v39 = vmul.f32 1.6732632, %v964_v26 }
 0x129   : > { %818 = vst.msk [vmem:[%s1374_s10 + $0x78] sm:$0xff] %vm802_vm3, %v785_v2  ;;  %v801_v8 = vmul.f32 1.050701, %v769_v6  ;;  %v752_v27 = vsel %vm720_vm2, %v1523_v18, %v688_v23 }
 0x12a   : > { %v784_v28 = vmul.f32 1.050701, %v752_v27  ;;  %v768_v55 = vsel %vm736_vm4, %v1526_v21, %v704_v39 }
 0x12b   : > { %834 = vst.msk [vmem:[%s1374_s10 + $0xf8] sm:$0xff] %vm802_vm3, %v801_v8  ;;  %v800_v29 = vmul.f32 1.050701, %v768_v55 }
 0x12c   : > { %817 = vst.msk [vmem:[%s1374_s10 + $0x70] sm:$0xff] %vm802_vm3, %v784_v28 }
 0x12d   : > { %833 = vst.msk [vmem:[%s1374_s10 + $0xf0] sm:$0xff] %vm802_vm3, %v800_v29 }
 0x12e PF: > { %s13_s12 = sadd.s32 1, %s1161_s12  }
 0x12f   : > { %p10_p4 = scmp.ge.s32.totalorder %s13_s12, 4  }
 0x131   :  { %12 = sbr.rel (!%p10_p4) target bundleno = 1 (0x1), region = 62 }

</bundles_post_ra>
